<compile_context>
chip_gen: v5e
topology: v5e:2x2
jax: 0.10.0
libtpu: 0.0.40
codegen_flags: <defaults>
</compile_context>

<pallas_src>
import jax
import jax.numpy as jnp
from jax import lax
from jax.experimental import pallas as pl
from jax.experimental.pallas import tpu as pltpu

K = 7            # kernel_size
PAD = K // 2     # padding = 3


def _sa_kernel(x_ref, m_ref, b_ref, o_ref):
    # x_ref : VMEM (Bblk, C, HW)   native dtype, lane-dense flat view of the input block
    # m_ref : VMEM (2*HW, HW)      bf16 fused conv operator [avg-rows ; max-rows] (pw folded in)
    # b_ref : SMEM (1,)            f32 pointwise bias
    # o_ref : VMEM (Bblk, C, HW)
    x = x_ref[...]                                   # native dtype (B, C, HW)
    inv_c = 1.0 / x.shape[1]

    # Channel pooling without materializing a full-block f32 copy:
    #   mean -> f32 accumulation only; max -> exact in the native dtype.
    avg = jnp.sum(x, axis=1, dtype=jnp.float32) * inv_c      # (B, HW) f32
    mx = jnp.max(x, axis=1)                                   # (B, HW) native

    # Fused depthwise-7x7 + pointwise-1x1 conv == one small bf16 matmul on the MXU.
    lhs = jnp.concatenate(
        [avg.astype(jnp.bfloat16), mx.astype(jnp.bfloat16)], axis=-1)   # (B, 2*HW)
    pre = jnp.dot(lhs, m_ref[...], preferred_element_type=jnp.float32) + b_ref[0]
    sa = jax.nn.sigmoid(pre).astype(x.dtype)                  # (B, HW)

    o_ref[...] = x * sa[:, None, :]


def _conv_as_matmul_operator(dw_weight, pw_weight, H, W):
    """Fused operator M (2*HW, HW), rows [0:HW] act on the avg map, [HW:2*HW] on the max map.

    M_c[p, q] = pw[c] * dw[c, 0, p_i - q_i + PAD, p_j - q_j + PAD]   (0 outside the 7x7 window)
    so that out[b, q] = sum_p avg[b, p]*M_0[p, q] + mx[b, p]*M_1[p, q].
    """
    HW = H * W
    pi = jnp.arange(HW, dtype=jnp.int32) // W
    pj = jnp.arange(HW, dtype=jnp.int32) % W
    di = pi[:, None] - pi[None, :]               # in_row - out_row, (HW, HW)
    dj = pj[:, None] - pj[None, :]               # in_col - out_col
    valid = (jnp.abs(di) <= PAD) & (jnp.abs(dj) <= PAD)
    ki = jnp.clip(di + PAD, 0, K - 1)
    kj = jnp.clip(dj + PAD, 0, K - 1)
    w = dw_weight[:, 0, :, :].astype(jnp.float32) * pw_weight.reshape(2, 1, 1).astype(jnp.float32)
    m = jnp.where(valid[None, :, :], w[:, ki, kj], 0.0)       # (2, HW, HW)
    return m.reshape(2 * HW, HW).astype(jnp.bfloat16)         # bf16: MXU-native, half the VMEM


def _vmem_budget():
    """(block_target_bytes, vmem_limit_bytes) gated on VMEM capacity.

    v5e/v6e (128 MiB physical VMEM): ~4 MiB blocks, 64 MiB scoped limit.
    v7x (64 MiB) / unknown: conservative ~2 MiB blocks, 32 MiB limit.
    """
    try:
        cap = pltpu.get_tpu_info().vmem_capacity_bytes
    except Exception:
        cap = 0
    if cap >= 128 * 1024 * 1024:
        return 4 << 20, 64 * 1024 * 1024
    return 2 << 20, 32 * 1024 * 1024


def spatial_attention(x, dw_weight, pw_weight, pw_bias):
    """x: (N, C, H, W); dw_weight: (2,1,K,K); pw_weight: (1,2,1,1); pw_bias: (1,)."""
    N, C, H, W = x.shape
    HW = H * W

    # Dense-operator path only for small/medium feature maps.
    # TODO(synk): banded / shifted-window depthwise conv fallback for large H*W.
    if 2 * HW * HW * 2 > (8 << 20):
        raise NotImplementedError("dense (2*HW, HW) conv operator too large for this H*W")

    m = _conv_as_matmul_operator(dw_weight, pw_weight, H, W)   # (2*HW, HW) bf16
    b_flat = pw_bias.reshape(-1).astype(jnp.float32)           # (1,)

    x_flat = x.reshape(N, C, HW)                               # lane-dense view

    block_target, vmem_limit = _vmem_budget()
    per_batch_bytes = C * HW * x.dtype.itemsize
    bblk = max(1, min(N, block_target // max(per_batch_bytes, 1)))
    if N > 1:
        # Keep >= 2 grid steps so both v7x TensorCores get work (no-op on v5e/v6e).
        bblk = min(bblk, max(1, N // 2))
    grid = pl.cdiv(N, bblk)   # ragged last block is masked; batch rows are independent

    out_flat = pl.pallas_call(
        _sa_kernel,
        out_shape=jax.ShapeDtypeStruct((N, C, HW), x.dtype),
        grid=(grid,),
        in_specs=[
            pl.BlockSpec((bblk, C, HW), lambda n: (n, 0, 0)),
            pl.BlockSpec((2 * HW, HW), lambda n: (0, 0)),      # constant index -> stays resident
            pl.BlockSpec(memory_space=pltpu.MemorySpace.SMEM),
        ],
        out_specs=pl.BlockSpec((bblk, C, HW), lambda n: (n, 0, 0)),
        compiler_params=pltpu.CompilerParams(
            dimension_semantics=("parallel",),
            vmem_limit_bytes=vmem_limit,
        ),
    )(x_flat, m, b_flat)

    return out_flat.reshape(N, C, H, W)


def ref_forward(x, dw_weight, pw_weight, pw_bias):
    """Pure-JAX reference matching the PyTorch module exactly."""
    avg = jnp.mean(x, axis=1, keepdims=True)
    mx = jnp.max(x, axis=1, keepdims=True)
    cat = jnp.concatenate([avg, mx], axis=1)               # (N, 2, H, W)
    dwo = lax.conv_general_dilated(
        cat, dw_weight, window_strides=(1, 1),
        padding=((PAD, PAD), (PAD, PAD)),
        dimension_numbers=("NCHW", "OIHW", "NCHW"),
        feature_group_count=2)                             # (N, 2, H, W)
    pre = jnp.sum(dwo * pw_weight.reshape(1, 2, 1, 1), axis=1, keepdims=True)
    pre = pre + pw_bias.reshape(1, 1, 1, 1)
    sa = jax.nn.sigmoid(pre)
    return x * sa


if __name__ == "__main__":
    key = jax.random.PRNGKey(0)
    k1, k2, k3, k4 = jax.random.split(key, 4)

    N, C, H, W = 2, 4, 16, 16
    x = jax.random.normal(k1, (N, C, H, W), jnp.float32)

    # Shapes from the module's __init__:
    #   depthwise: Conv2d(2, 2, 7, groups=2, bias=False) -> weight (2, 1, 7, 7)
    #   pointwise: Conv2d(2, 1, 1, bias=True)            -> weight (1, 2, 1, 1), bias (1,)
    dw_weight = jax.random.normal(k2, (2, 1, K, K), jnp.float32) * 0.1
    pw_weight = jax.random.normal(k3, (1, 2, 1, 1), jnp.float32) * 0.5
    pw_bias = jax.random.normal(k4, (1,), jnp.float32) * 0.1

    out = spatial_attention(x, dw_weight, pw_weight, pw_bias)
    jax.block_until_ready(out)

    ref = ref_forward(x, dw_weight, pw_weight, pw_bias)
    assert out.shape == ref.shape and out.dtype == ref.dtype
    # Tolerance covers the bf16 operand rounding on the small fused conv matmul
    # (f32 accumulation); real indexing/semantic bugs produce O(0.1) errors.
    assert jnp.max(jnp.abs(out - ref)) < 1e-2, "mismatch vs. pure-JAX reference"

    print("KERNEL_OK")
</pallas_src>

<mosaic_0001>
module attributes {stable_mosaic.version = 11 : i64} {
  func.func @_sa_kernel(%arg0: i32, %arg1: memref<1x4x256xf32, #tpu.memory_space<vmem>>, %arg2: memref<512x256xbf16, #tpu.memory_space<vmem>>, %arg3: memref<1xf32, #tpu.memory_space<smem>>, %arg4: memref<1x4x256xf32, #tpu.memory_space<vmem>>) attributes {dimension_semantics = [#tpu.dimension_semantics<parallel>], iteration_bounds = array<i64: 2>, scalar_prefetch = 0 : i64, scratch_operands = 0 : i64, tpu.core_type = #tpu.core_type<tc>, window_params = [{transform_indices = @transform_0, window_bounds = array<i64: 1, 4, 256>}, {pipeline_mode = #tpu.pipeline_mode<synchronous>, transform_indices = @transform_1, window_bounds = array<i64: 512, 256>}, {transform_indices = @transform_2, window_bounds = array<i64: 1>}, {transform_indices = @transform_3, window_bounds = array<i64: 1, 4, 256>}]} {
    %c0 = arith.constant 0 : index
    %c0_0 = arith.constant 0 : index
    %c0_1 = arith.constant 0 : index
    %0 = vector.load %arg1[%c0, %c0_0, %c0_1] : memref<1x4x256xf32, #tpu.memory_space<vmem>>, vector<1x4x256xf32>
    %cst = arith.constant dense<0.000000e+00> : vector<1x256xf32>
    %1 = vector.multi_reduction <add>, %0, %cst [1] : vector<1x4x256xf32> to vector<1x256xf32>
    %cst_2 = arith.constant 2.500000e-01 : f32
    %2 = vector.broadcast %cst_2 : f32 to vector<1x256xf32>
    %3 = arith.mulf %1, %2 : vector<1x256xf32>
    %cst_3 = arith.constant dense<0xFF800000> : vector<1x256xf32>
    %4 = vector.multi_reduction <maximumf>, %0, %cst_3 [1] : vector<1x4x256xf32> to vector<1x256xf32>
    %5 = arith.truncf %3 : vector<1x256xf32> to vector<1x256xbf16>
    %6 = arith.truncf %4 : vector<1x256xf32> to vector<1x256xbf16>
    %7 = tpu.concatenate %5, %6 in 1 : vector<1x256xbf16>, vector<1x256xbf16> -> vector<1x512xbf16>
    %c0_4 = arith.constant 0 : index
    %c0_5 = arith.constant 0 : index
    %8 = vector.load %arg2[%c0_4, %c0_5] : memref<512x256xbf16, #tpu.memory_space<vmem>>, vector<512x256xbf16>
    %cst_6 = arith.constant dense<0.000000e+00> : vector<1x256xf32>
    %9 = tpu.matmul %7, %8, %cst_6 {dimension_numbers = #tpu.dot_dimension_numbers<[1], [0], [0], [1], [0, 0, 1, 1], [], []>} : vector<1x512xbf16>, vector<512x256xbf16>, vector<1x256xf32> -> vector<1x256xf32>
    %c0_7 = arith.constant 0 : index
    %10 = memref.load %arg3[%c0_7] : memref<1xf32, #tpu.memory_space<smem>>
    %11 = vector.broadcast %10 : f32 to vector<1x256xf32>
    %12 = arith.addf %9, %11 : vector<1x256xf32>
    %13 = arith.negf %12 : vector<1x256xf32>
    %14 = math.exp %13 : vector<1x256xf32>
    %cst_8 = arith.constant 1.000000e+00 : f32
    %15 = vector.broadcast %cst_8 : f32 to vector<1x256xf32>
    %16 = arith.addf %15, %14 : vector<1x256xf32>
    %17 = arith.divf %15, %16 : vector<1x256xf32>
    %18 = vector.shape_cast %17 : vector<1x256xf32> to vector<1x1x256xf32>
    %19 = vector.broadcast %18 : vector<1x1x256xf32> to vector<1x4x256xf32>
    %20 = arith.mulf %0, %19 : vector<1x4x256xf32>
    %c0_9 = arith.constant 0 : index
    %c0_10 = arith.constant 0 : index
    %c0_11 = arith.constant 0 : index
    %21 = vector.load %arg4[%c0_9, %c0_10, %c0_11] : memref<1x4x256xf32, #tpu.memory_space<vmem>>, vector<1x4x256xf32>
    tpu.vector_store %arg4[%c0_9, %c0_10, %c0_11], %20 {strides = array<i32>} : memref<1x4x256xf32, #tpu.memory_space<vmem>>, vector<1x4x256xf32>,
    return
  }
  func.func @transform_0(%arg0: i32) -> (i32, i32, i32) {
    %c0_i32 = arith.constant 0 : i32
    %c0_i32_0 = arith.constant 0 : i32
    %c0_i32_1 = arith.constant 0 : i32
    return %arg0, %c0_i32, %c0_i32_0 : i32, i32, i32
  }
  func.func @transform_1(%arg0: i32) -> (i32, i32) {
    %c0_i32 = arith.constant 0 : i32
    %c0_i32_0 = arith.constant 0 : i32
    %c0_i32_1 = arith.constant 0 : i32
    return %c0_i32, %c0_i32_0 : i32, i32
  }
  func.func @transform_2(%arg0: i32) -> i32 {
    %c0_i32 = arith.constant 0 : i32
    %c0_i32_0 = arith.constant 0 : i32
    return %c0_i32 : i32
  }
  func.func @transform_3(%arg0: i32) -> (i32, i32, i32) {
    %c0_i32 = arith.constant 0 : i32
    %c0_i32_0 = arith.constant 0 : i32
    %c0_i32_1 = arith.constant 0 : i32
    return %arg0, %c0_i32, %c0_i32_0 : i32, i32, i32
  }
}

</mosaic_0001>

<bundles_post_ra>
// kernel: tpu_custom_call.1
= control target key start
LH: loop header
LB: loop body
LE: loop exit
PB: predicated region body
PF: predicated region fallthrough
CT: control target
= control target key end

     0   :  { %s1620_s0 = inlined_call_operand.hbm [shape: f32[2,4,256], index: 0, kind: input, shape index: {}]   ;;  %s1621_s1 = inlined_call_operand.hbm [shape: bf16[512,256], index: 1, kind: input, shape index: {}]   ;;  %s1622_s2 = inlined_call_operand.<no memory space> [shape: f32[1], index: 2, kind: input, shape index: {}]   ;;  %s1623_s3 = inlined_call_operand.hbm [shape: f32[2,4,256], index: 3, kind: output, shape index: {}]  }
   0x1   :  { %8 = sst [smem:[#allocation2]] %s1622_s2 }
   0x2   :  { %9 = vsyncpa [#allocation4], 0 }
   0x3   :  { %11 = vsyncpa [#allocation4 + $0x1], 0 }
   0x4   :  { %12 = vsyncpa [#allocation7], 0 }
   0x5   :  { %13 = vsyncpa [#allocation5], 0 }
   0x6   :  { %15 = vsyncpa [#allocation5 + $0x1], 0  ;;  %s1461_s14 = smov 0   ;;  %s1463_s15 = smov 0  }
   0x7   :  { %s1465_s16 = smov 0   ;;  %s1467_s17 = smov 0  }
   0x8 LB: > { %s131_s19 = sshll.u32 %s1621_s1, 4  ;;  %s1485_s20 = sadd.s32 4294967295, %s1433_s17   ;;  %s1433_s17 = sphi %s1467_s17, %s1635_s17   ;;  %s1429_s16 = sphi %s1465_s16, %s1634_s16   ;;  %s1425_s15 = sphi %s1463_s15, %s1633_s15   ;;  %s1421_s14 = sphi %s1461_s14, %s1632_s14   ;;  %s132_s19 = int_to_ptr.hbm [resolvable:$true] %s131_s19 }
   0x9   : > { %p897_p0 = scmp.ge.s32.totalorder %s1433_s17, 1  ;;  %p42_p1 = scmp.eq.s32.totalorder %s1485_s20, 0 }
   0xa   : > { %p120_p2 = scmp.lt.s32.totalorder %s1433_s17, 3  ;;  %s1435_s22 = smov [#allocation6]  }
   0xb   : > { %s133_s23 = sshll.u32 %s1435_s22, 4  ;;  %s1436_s24 = smov 128   ;;  %s134_s23 = int_to_ptr.vmem [resolvable:$true] %s133_s23 }
   0xc   : > { %p1490_p3 = pnand %p897_p0, %p120_p2  ;;  %s1437_s25 = smov 8  }
   0xd   : > { %s896_s26 = sadd.s32 4294967294, %s1433_s17   ;;  %s1501_s27 = sadd.s32 1, %s1433_s17  }
   0xe   : > { %p1244_p4 = pneg %p1490_p3  ;;  %s28_s28 = sadd.s32 1, %s1429_s16 }
   0xf   : > { %s25_s29 = ssub.s32 %s1433_s17, %s1501_s27  ;;  %p35_p7 = scmp.ne.s32.totalorder %s1429_s16, %s1425_s15 }
  0x10   : > { %p1245_p6 = pnand %p1244_p4, %p42_p1  ;;  %p26_p8 = scmp.eq.s32.totalorder %s25_s29, 0 }
  0x11   : > { %p36_p9 = scmp.eq.s32.totalorder %s1433_s17, 0  ;;  %p41_p10 = scmp.ne.s32.totalorder %s1425_s15, %s1421_s14 }
  0x12   : > { %1247 = dma.hbm_to_vmem [thread:$0]  (!%p1245_p6), %s132_s19, 8192, %s134_s23, [#allocation7], %s1436_s24, %s1436_s24, %s1437_s25  }
  0x13   : > { %p107_p11 = scmp.eq.s32.totalorder %s1485_s20, 1  ;;  %p1517_p12 = por %p42_p1, %p41_p10 }
  0x14   : > { %s1513_s30 = scalar_select %p26_p8, %s1429_s16, %s28_s28  }
  0x15   : > { %p1521_p13 = por %p107_p11, %p35_p7  ;;  %p113_p0 = scmp.eq.s32.totalorder %s896_s26, 1 }
  0x16   : > { %p37_p2 = por %p36_p9, %p35_p7  ;;  %s150_s6 = sand.u32 1, %s1429_s16  }
  0x17   : > { %p1526_p4 = por %p113_p0, %p41_p10  ;;  %p1257_p6 = scmp.lt.s32.totalorder %s1433_s17, 2 }
  0x18   : > { %s900_s8 = sshll.u32 %s150_s6, 3  ;;  %s1170_s9 = sshll.u32 %s1433_s17, 3 }
  0x19   : > { %s159_s12 = scalar_lea.hbm %s1620_s0, %s1170_s9  ;;  %s154_s2 = scalar_lea.vmem [#allocation3], %s900_s8 }
  0x1a   : > { %s161_s13 = sshll.u32 %s159_s12, 4  ;;  %s163_s18 = sshll.u32 %s154_s2, 4  ;;  %s162_s13 = int_to_ptr.hbm [resolvable:$true] %s161_s13  ;;  %s164_s18 = int_to_ptr.vmem [resolvable:$true] %s163_s18 }
  0x1b   : > { %p1535_p8 = pnand %p1257_p6, %p37_p2  ;;  %s151_s22 = scalar_lea.sflag [#allocation4], %s150_s6 }
  0x1c   : > { %s1333_s23 = sshra.s32 %s162_s13, 4  ;;  %s1340_s28 = scalar_lea.hbm %s1620_s0, 16  ;;  %s1334_s23 = int_to_ptr.hbm [resolvable:$true] %s1333_s23 }
  0x1d   : > { %s1335_s24 = scalar_lea.hbm %s1334_s23, 8  ;;  %p1337_p9 = pneg %p1535_p8 }
  0x1e   : > { %p1336_p7 = scmp.ne.s32.totalorder %s1334_s23, %s1335_s24  ;;  %p1341_p0 = scmp.lt.s32.totalorder %s1334_s23, %s1620_s0 }
  0x1f   : > { %p1342_p2 = scmp.lt.s32.totalorder %s1340_s28, %s1335_s24 }
  0x20   : > { %p1338_p10 = pnand %p1337_p9, %p1336_p7 }
  0x21   : > { %p1343_p6 = por %p1342_p2, %p1341_p0 }
  0x22   : > { %p1339_p11 = pneg %p1338_p10 }
  0x24   : > { %p1344_p5 = pnand %p1343_p6, %p1339_p11 }
  0x26   : > { %1347 = shalt.err (!%p1344_p5)
}
  0x27   : > { %1251 = dma.hbm_to_vmem [thread:$0]  (!%p1535_p8), %s162_s13, 128, %s164_s18, %s151_s22  }
  0x28   : > { %172 = sbr.rel (%p1490_p3) target bundleno = 293 (0x125), region = 32  ;;  %s1552_s6 = sand.u32 (!%p1490_p3), 1, %s1425_s15  }
  0x29   : > { %s904_s9 = sshll.u32 (!%p1490_p3), %s1552_s6, 3  ;;  %s175_s10 = scalar_lea.sflag (!%p1490_p3), [#allocation4], %s1552_s6 }
  0x2a   : > { %s1558_s11 = scalar_lea.vmem (!%p1490_p3), [#allocation3], %s904_s9 }
  0x2d   : > { %1408 = dma.done.wait (%p1517_p12), %s175_s10, 128  }
  0x2e   : > { %1410 = vsyncadd (%p1517_p12), %s175_s10, 4294967168 }
  0x2f   : > { %1412 = dma.done.wait (%p42_p1), [#allocation7], 8192  }
  0x30   : > { %1414 = vsyncadd (%p42_p1), [#allocation7], 4294959104  ;;  %v965_v0 = vld [vmem:[#allocation6 + $0x70] sm:$0xf]  ;;  %v1186_v1 = vld [vmem:[#allocation6 + $0x74] sm:$0xf0] }
  0x31   : > { %v1029_v2 = vld [vmem:[#allocation6 + $0xf0] sm:$0xf]  ;;  %v966_v3 = vor.u32 %v1186_v1, %v965_v0  ;;  %v1202_v4 = vld [vmem:[#allocation6 + $0xf4] sm:$0xf0]  ;;  %v957_v11 = vld [vmem:[#allocation6 + $0x60] sm:$0xf] }
  0x32   : > { %v1093_v5 = vld [vmem:[#allocation6 + $0x170] sm:$0xf]  ;;  %v1218_v6 = vld [vmem:[#allocation6 + $0x174] sm:$0xf0]  ;;  %v1030_v7 = vor.u32 %v1202_v4, %v1029_v2  ;;  %v1184_v13 = vld [vmem:[#allocation6 + $0x64] sm:$0xf0] }
  0x33   : > { %v1094_v8 = vor.u32 %v1218_v6, %v1093_v5  ;;  %v1157_v9 = vld [vmem:[#allocation6 + $0x1f0] sm:$0xf]  ;;  %v1234_v10 = vld [vmem:[#allocation6 + $0x1f4] sm:$0xf0]  ;;  %648 = vmatpush.bf16.msra.mxu0 %v966_v3  ;;  %v1021_v14 = vld [vmem:[#allocation6 + $0xe0] sm:$0xf]  ;;  %v958_v16 = vor.u32 %v1184_v13, %v957_v11 }
  0x34   : > { %v1158_v12 = vor.u32 %v1234_v10, %v1157_v9  ;;  %v1200_v15 = vld [vmem:[#allocation6 + $0xe4] sm:$0xf0]  ;;  %661 = vmatpush.bf16.msra.mxu1 %v1030_v7  ;;  %v1085_v18 = vld [vmem:[#allocation6 + $0x160] sm:$0xf]  ;;  %v949_v23 = vld [vmem:[#allocation6 + $0x50] sm:$0xf] }
  0x35   : > { %674 = vmatpush.bf16.msra.mxu2 %v1094_v8  ;;  %v1022_v17 = vor.u32 %v1200_v15, %v1021_v14  ;;  %v1216_v19 = vld [vmem:[#allocation6 + $0x164] sm:$0xf0]  ;;  %v1149_v20 = vld [vmem:[#allocation6 + $0x1e0] sm:$0xf]  ;;  %v1182_v24 = vld [vmem:[#allocation6 + $0x54] sm:$0xf0] }
  0x36   : > { %687 = vmatpush.bf16.msra.mxu3 %v1158_v12  ;;  %v1086_v21 = vor.u32 %v1216_v19, %v1085_v18  ;;  %v1232_v22 = vld [vmem:[#allocation6 + $0x1e4] sm:$0xf0]  ;;  %v1013_v26 = vld [vmem:[#allocation6 + $0xd0] sm:$0xf]  ;;  %v1198_v27 = vld [vmem:[#allocation6 + $0xd4] sm:$0xf0]  ;;  %v950_v29 = vor.u32 %v1182_v24, %v949_v23 }
  0x37   : > { %v1150_v25 = vor.u32 %v1232_v22, %v1149_v20  ;;  %v1077_v28 = vld [vmem:[#allocation6 + $0x150] sm:$0xf]  ;;  %649 = vmatpush.bf16.msra.mxu0 %v958_v16  ;;  %v1214_v30 = vld [vmem:[#allocation6 + $0x154] sm:$0xf0]  ;;  %v1014_v33 = vor.u32 %v1198_v27, %v1013_v26  ;;  %v941_v35 = vld [vmem:[#allocation6 + $0x40] sm:$0xf] }
  0x38   : > { %v1141_v31 = vld [vmem:[#allocation6 + $0x1d0] sm:$0xf]  ;;  %v1230_v32 = vld [vmem:[#allocation6 + $0x1d4] sm:$0xf0]  ;;  %662 = vmatpush.bf16.msra.mxu1 %v1022_v17  ;;  %v1078_v34 = vor.u32 %v1214_v30, %v1077_v28  ;;  %v1180_v36 = vld [vmem:[#allocation6 + $0x44] sm:$0xf0] }
  0x39   : > { %675 = vmatpush.bf16.msra.mxu2 %v1086_v21  ;;  %v1005_v37 = vld [vmem:[#allocation6 + $0xc0] sm:$0xf]  ;;  %v1142_v38 = vor.u32 %v1230_v32, %v1141_v31  ;;  %v1196_v39 = vld [vmem:[#allocation6 + $0xc4] sm:$0xf0]  ;;  %v942_v44 = vor.u32 %v1180_v36, %v941_v35  ;;  %v933_v47 = vld [vmem:[#allocation6 + $0x30] sm:$0xf] }
  0x3a   : > { %688 = vmatpush.bf16.msra.mxu3 %v1150_v25  ;;  %v1069_v40 = vld [vmem:[#allocation6 + $0x140] sm:$0xf]  ;;  %v1212_v41 = vld [vmem:[#allocation6 + $0x144] sm:$0xf0]  ;;  %v1006_v45 = vor.u32 %v1196_v39, %v1005_v37  ;;  %v1178_v48 = vld [vmem:[#allocation6 + $0x34] sm:$0xf0] }
  0x3b   : > { %v1133_v42 = vld [vmem:[#allocation6 + $0x1c0] sm:$0xf]  ;;  %v1228_v43 = vld [vmem:[#allocation6 + $0x1c4] sm:$0xf0]  ;;  %650 = vmatpush.bf16.msra.mxu0 %v950_v29  ;;  %v1070_v46 = vor.u32 %v1212_v41, %v1069_v40  ;;  %v997_v49 = vld [vmem:[#allocation6 + $0xb0] sm:$0xf]  ;;  %v934_v56 = vor.u32 %v1178_v48, %v933_v47 }
  0x3c   : > { %663 = vmatpush.bf16.msra.mxu1 %v1014_v33  ;;  %v1134_v50 = vor.u32 %v1228_v43, %v1133_v42  ;;  %v1194_v51 = vld [vmem:[#allocation6 + $0xb4] sm:$0xf0]  ;;  %v1061_v52 = vld [vmem:[#allocation6 + $0x130] sm:$0xf]  ;;  %v925_v59 = vld [vmem:[#allocation6 + $0x20] sm:$0xf] }
  0x3d   : > { %676 = vmatpush.bf16.msra.mxu2 %v1078_v34  ;;  %v1210_v53 = vld [vmem:[#allocation6 + $0x134] sm:$0xf0]  ;;  %v1125_v54 = vld [vmem:[#allocation6 + $0x1b0] sm:$0xf]  ;;  %v998_v57 = vor.u32 %v1194_v51, %v997_v49  ;;  %v1176_v60 = vld [vmem:[#allocation6 + $0x24] sm:$0xf0] }
  0x3e   : > { %689 = vmatpush.bf16.msra.mxu3 %v1142_v38  ;;  %v1226_v55 = vld [vmem:[#allocation6 + $0x1b4] sm:$0xf0]  ;;  %v1062_v58 = vor.u32 %v1210_v53, %v1061_v52  ;;  %v989_v61 = vld [vmem:[#allocation6 + $0xa0] sm:$0xf]  ;;  %v1192_v63 = vld [vmem:[#allocation6 + $0xa4] sm:$0xf0]  ;;  %v926_v4 = vor.u32 %v1176_v60, %v925_v59 }
  0x3f   : > { %651 = vmatpush.bf16.msra.mxu0 %v942_v44  ;;  %v1126_v62 = vor.u32 %v1226_v55, %v1125_v54  ;;  %v1053_v0 = vld [vmem:[#allocation6 + $0x120] sm:$0xf]  ;;  %v1208_v1 = vld [vmem:[#allocation6 + $0x124] sm:$0xf0]  ;;  %v990_v5 = vor.u32 %v1192_v63, %v989_v61  ;;  %v917_v7 = vld [vmem:[#allocation6 + $0x10] sm:$0xf] }
  0x40   : > { %664 = vmatpush.bf16.msra.mxu1 %v1006_v45  ;;  %v1117_v2 = vld [vmem:[#allocation6 + $0x1a0] sm:$0xf]  ;;  %v1224_v3 = vld [vmem:[#allocation6 + $0x1a4] sm:$0xf0]  ;;  %v1054_v6 = vor.u32 %v1208_v1, %v1053_v0  ;;  %v1174_v8 = vld [vmem:[#allocation6 + $0x14] sm:$0xf0] }
  0x41   : > { %677 = vmatpush.bf16.msra.mxu2 %v1070_v46  ;;  %v981_v9 = vld [vmem:[#allocation6 + $0x90] sm:$0xf]  ;;  %v1118_v10 = vor.u32 %v1224_v3, %v1117_v2  ;;  %v1190_v11 = vld [vmem:[#allocation6 + $0x94] sm:$0xf0]  ;;  %v909_v16 = vld [vmem:[#allocation6] sm:$0xf]  ;;  %v918_v17 = vor.u32 %v1174_v8, %v917_v7 }
  0x42   : > { %690 = vmatpush.bf16.msra.mxu3 %v1134_v50  ;;  %v1045_v12 = vld [vmem:[#allocation6 + $0x110] sm:$0xf]  ;;  %v1206_v13 = vld [vmem:[#allocation6 + $0x114] sm:$0xf0]  ;;  %v1172_v18 = vld [vmem:[#allocation6 + $0x4] sm:$0xf0]  ;;  %v982_v21 = vor.u32 %v1190_v11, %v981_v9 }
  0x43   : > { %652 = vmatpush.bf16.msra.mxu0 %v934_v56  ;;  %v1109_v14 = vld [vmem:[#allocation6 + $0x190] sm:$0xf]  ;;  %v1222_v15 = vld [vmem:[#allocation6 + $0x194] sm:$0xf0]  ;;  %v973_v19 = vld [vmem:[#allocation6 + $0x80] sm:$0xf]  ;;  %v1046_v22 = vor.u32 %v1206_v13, %v1045_v12  ;;  %v910_v32 = vor.u32 %v1172_v18, %v909_v16 }
  0x44   : > { %665 = vmatpush.bf16.msra.mxu1 %v998_v57  ;;  %v1188_v20 = vld [vmem:[#allocation6 + $0x84] sm:$0xf0]  ;;  %v1037_v23 = vld [vmem:[#allocation6 + $0x100] sm:$0xf]  ;;  %v1569_v25 = vld [vmem:[%s1558_s11] sm:$0xff]  ;;  %v1110_v26 = vor.u32 %v1222_v15, %v1109_v14  ;;  %vm214_vm0 = vcmask 1043456  }
  0x45   : > { %678 = vmatpush.bf16.msra.mxu2 %v1062_v58  ;;  %v1204_v24 = vld [vmem:[#allocation6 + $0x104] sm:$0xf0]  ;;  %v1101_v27 = vld [vmem:[#allocation6 + $0x180] sm:$0xf]  ;;  %209 = vst [vmem:[#allocation1] ss:$2 sm:$0xff] %v1569_v25  ;;  %v974_v36 = vor.u32 %v1188_v20, %v973_v19 }
  0x46   : > { %691 = vmatpush.bf16.msra.mxu3 %v1126_v62  ;;  %v1220_v28 = vld [vmem:[#allocation6 + $0x184] sm:$0xf0]  ;;  %v1185_v29 = vld [vmem:[#allocation6 + $0x74] sm:$0xf]  ;;  %v967_v30 = vld [vmem:[#allocation6 + $0x78] sm:$0xf0]  ;;  %v1038_v37 = vor.u32 %v1204_v24, %v1037_v23 }
  0x47   : > { %653 = vmatpush.bf16.msra.mxu0 %v926_v4  ;;  %v1201_v31 = vld [vmem:[#allocation6 + $0xf4] sm:$0xf]  ;;  %v1031_v33 = vld [vmem:[#allocation6 + $0xf8] sm:$0xf0]  ;;  %v1102_v40 = vor.u32 %v1220_v28, %v1101_v27  ;;  %v970_v41 = vor.u32 %v1185_v29, %v967_v30  ;;  %v1183_v42 = vld [vmem:[#allocation6 + $0x64] sm:$0xf] }
  0x48   : > { %666 = vmatpush.bf16.msra.mxu1 %v990_v5  ;;  %v1217_v34 = vld [vmem:[#allocation6 + $0x174] sm:$0xf]  ;;  %v1095_v35 = vld [vmem:[#allocation6 + $0x178] sm:$0xf0]  ;;  %v959_v43 = vld [vmem:[#allocation6 + $0x68] sm:$0xf0]  ;;  %v1034_v44 = vor.u32 %v1201_v31, %v1031_v33 }
  0x49   : > { %679 = vmatpush.bf16.msra.mxu2 %v1054_v6  ;;  %v1233_v38 = vld [vmem:[#allocation6 + $0x1f4] sm:$0xf]  ;;  %v1159_v39 = vld [vmem:[#allocation6 + $0x1f8] sm:$0xf0]  ;;  %v1098_v45 = vor.u32 %v1217_v34, %v1095_v35  ;;  %v1199_v46 = vld [vmem:[#allocation6 + $0xe4] sm:$0xf]  ;;  %v962_v57 = vor.u32 %v1183_v42, %v959_v43 }
  0x4a   : > { %692 = vmatpush.bf16.msra.mxu3 %v1118_v10  ;;  %v1023_v47 = vld [vmem:[#allocation6 + $0xe8] sm:$0xf0]  ;;  %v1215_v48 = vld [vmem:[#allocation6 + $0x164] sm:$0xf]  ;;  %v1162_v49 = vor.u32 %v1233_v38, %v1159_v39  ;;  %v1181_v58 = vld [vmem:[#allocation6 + $0x54] sm:$0xf] }
  0x4b   : > { %654 = vmatpush.bf16.msra.mxu0 %v918_v17  ;;  %v1087_v50 = vld [vmem:[#allocation6 + $0x168] sm:$0xf0]  ;;  %v1231_v51 = vld [vmem:[#allocation6 + $0x1e4] sm:$0xf]  ;;  %v1026_v61 = vor.u32 %v1199_v46, %v1023_v47  ;;  %v951_v63 = vld [vmem:[#allocation6 + $0x58] sm:$0xf0] }
  0x4c   : > { %667 = vmatpush.bf16.msra.mxu1 %v982_v21  ;;  %v1151_v52 = vld [vmem:[#allocation6 + $0x1e8] sm:$0xf0]  ;;  %v211_v54 = vld.sshfl [vmem:[#allocation1 + $0x8] sm:$0xff pattern:$0x75316420]  ;;  %v1090_v62 = vor.u32 %v1215_v48, %v1087_v50  ;;  %v954_v10 = vor.u32 %v1181_v58, %v951_v63  ;;  %s326_s21 = sld [smem:[#allocation2]] }
  0x4d   : > { %680 = vmatpush.bf16.msra.mxu2 %v1046_v22  ;;  %v210_v53 = vld.sshfl [vmem:[#allocation1] sm:$0xff pattern:$0x75316420]  ;;  %v222_v56 = vsel %vm214_vm0, %v211_v54, 0.0  ;;  %v1197_v0 = vld [vmem:[#allocation6 + $0xd4] sm:$0xf]  ;;  %v1154_v1 = vor.u32 %v1231_v51, %v1151_v52 }
  0x4e   : > { %693 = vmatpush.bf16.msra.mxu3 %v1110_v26  ;;  %231 = vst [vmem:[#allocation1] ss:$2 sm:$0xff] %v1569_v25  ;;  %v215_v55 = vsel %vm214_vm0, %v210_v53, 0.0  ;;  %v223_v60 = vrot.slane %v222_v56, 4  ;;  %v1015_v2 = vld [vmem:[#allocation6 + $0xd8] sm:$0xf0] }
  0x4f   : > { %655 = vmatpush.bf16.msra.mxu0 %v910_v32  ;;  %v216_v59 = vrot.slane %v215_v55, 4  ;;  %v1213_v3 = vld [vmem:[#allocation6 + $0x154] sm:$0xf]  ;;  %v1079_v4 = vld [vmem:[#allocation6 + $0x158] sm:$0xf0]  ;;  %v1018_v16 = vor.u32 %v1197_v0, %v1015_v2  ;;  %s1235_s4 = sshll.u32 %s1485_s20, 3 }
  0x50   : > { %668 = vmatpush.bf16.msra.mxu1 %v974_v36  ;;  %v224_v6 = vadd.f32 %v223_v60, %v222_v56  ;;  %v1229_v7 = vld [vmem:[#allocation6 + $0x1d4] sm:$0xf]  ;;  %v1143_v8 = vld [vmem:[#allocation6 + $0x1d8] sm:$0xf0]  ;;  %v1179_v9 = vld [vmem:[#allocation6 + $0x44] sm:$0xf]  ;;  %v1082_v17 = vor.u32 %v1213_v3, %v1079_v4  ;;  %s811_s2 = scalar_lea.hbm %s1623_s3, %s1235_s4 }
  0x51   : > { %681 = vmatpush.bf16.msra.mxu2 %v1038_v37  ;;  %v217_v5 = vadd.f32 %v216_v59, %v215_v55  ;;  %v943_v11 = vld [vmem:[#allocation6 + $0x48] sm:$0xf0]  ;;  %v1195_v12 = vld [vmem:[#allocation6 + $0xc4] sm:$0xf]  ;;  %v1146_v20 = vor.u32 %v1229_v7, %v1143_v8  ;;  %v1177_v29 = vld [vmem:[#allocation6 + $0x34] sm:$0xf] }
  0x52   : > { %694 = vmatpush.bf16.msra.mxu3 %v1102_v40  ;;  %v1007_v13 = vld [vmem:[#allocation6 + $0xc8] sm:$0xf0]  ;;  %v225_v15 = vrot.slane %v224_v6, 2  ;;  %v1211_v18 = vld [vmem:[#allocation6 + $0x144] sm:$0xf]  ;;  %v946_v28 = vor.u32 %v1179_v9, %v943_v11  ;;  %s206_s18 = scalar_lea.vmem [#allocation8], %s904_s9 }
  0x53   : > { %700 = vmatpush.bf16.msrb.mxu0 %v970_v41  ;;  %v218_v14 = vrot.slane %v217_v5, 2  ;;  %v1071_v19 = vld [vmem:[#allocation6 + $0x148] sm:$0xf0]  ;;  %v1227_v21 = vld [vmem:[#allocation6 + $0x1c4] sm:$0xf]  ;;  %v1010_v34 = vor.u32 %v1195_v12, %v1007_v13  ;;  %s813_s19 = sshll.u32 %s206_s18, 4  ;;  %s814_s19 = int_to_ptr.vmem [resolvable:$true] %s813_s19 }
  0x54   : > { %713 = vmatpush.bf16.msrb.mxu1 %v1034_v44  ;;  %v1135_v22 = vld [vmem:[#allocation6 + $0x1c8] sm:$0xf0]  ;;  %v226_v27 = vadd.f32 %v225_v15, %v224_v6  ;;  %v935_v30 = vld [vmem:[#allocation6 + $0x38] sm:$0xf0]  ;;  %v1193_v31 = vld [vmem:[#allocation6 + $0xb4] sm:$0xf]  ;;  %v1074_v35 = vor.u32 %v1211_v18, %v1071_v19 }
  0x55   : > { %726 = vmatpush.bf16.msrb.mxu2 %v1098_v45  ;;  %v232_v23 = vld.sshfl [vmem:[#allocation1] sm:$0xff pattern:$0x75316420]  ;;  %v233_v24 = vld.sshfl [vmem:[#allocation1 + $0x8] sm:$0xff pattern:$0x75316420]  ;;  %v219_v26 = vadd.f32 %v218_v14, %v217_v5  ;;  %v1138_v43 = vor.u32 %v1227_v21, %v1135_v22  ;;  %v938_v52 = vor.u32 %v1177_v29, %v935_v30 }
  0x56   : > { %739 = vmatpush.bf16.msrb.mxu3 %v1162_v49  ;;  %v236_v32 = vsel %vm214_vm0, %v232_v23, -inf  ;;  %v243_v33 = vsel %vm214_vm0, %v233_v24, -inf  ;;  %v999_v36 = vld [vmem:[#allocation6 + $0xb8] sm:$0xf0]  ;;  %v1209_v37 = vld [vmem:[#allocation6 + $0x134] sm:$0xf] }
  0x57   : > { %701 = vmatpush.bf16.msrb.mxu0 %v962_v57  ;;  %v237_v38 = vrot.slane %v236_v32, 4  ;;  %v244_v39 = vrot.slane %v243_v33, 4  ;;  %v220_v40 = vrot.slane %v219_v26, 1  ;;  %v227_v41 = vrot.slane %v226_v27, 1  ;;  %v1063_v42 = vld [vmem:[#allocation6 + $0x138] sm:$0xf0] }
  0x58   : > { %714 = vmatpush.bf16.msrb.mxu1 %v1026_v61  ;;  %v1225_v44 = vld [vmem:[#allocation6 + $0x1b4] sm:$0xf]  ;;  %v1127_v49 = vld [vmem:[#allocation6 + $0x1b8] sm:$0xf0]  ;;  %v1175_v50 = vld [vmem:[#allocation6 + $0x24] sm:$0xf]  ;;  %v1002_v53 = vor.u32 %v1193_v31, %v999_v36  ;;  %v1066_v54 = vor.u32 %v1209_v37, %v1063_v42 }
  0x59   : > { %727 = vmatpush.bf16.msrb.mxu2 %v1090_v62  ;;  %v238_v45 = vmax.f32 %v236_v32, %v237_v38  ;;  %v245_v46 = vmax.f32 %v243_v33, %v244_v39  ;;  %v221_v47 = vadd.f32 %v220_v40, %v219_v26  ;;  %v228_v48 = vadd.f32 %v227_v41, %v226_v27  ;;  %v927_v51 = vld [vmem:[#allocation6 + $0x28] sm:$0xf0]  ;;  %v1191_v55 = vld [vmem:[#allocation6 + $0xa4] sm:$0xf]  ;;  %v1173_v8 = vld [vmem:[#allocation6 + $0x14] sm:$0xf] }
  0x5a   : > { %740 = vmatpush.bf16.msrb.mxu3 %v1154_v1  ;;  %v991_v56 = vld [vmem:[#allocation6 + $0xa8] sm:$0xf0]  ;;  %v1207_v57 = vld [vmem:[#allocation6 + $0x124] sm:$0xf]  ;;  %v1130_v63 = vor.u32 %v1225_v44, %v1127_v49  ;;  %v930_v5 = vor.u32 %v1175_v50, %v927_v51  ;;  %v919_v13 = vld [vmem:[#allocation6 + $0x18] sm:$0xf0] }
  0x5b   : > { %702 = vmatpush.bf16.msrb.mxu0 %v954_v10  ;;  %v239_v58 = vrot.slane %v238_v45, 2  ;;  %v246_v59 = vrot.slane %v245_v46, 2  ;;  %v229_v60 = vmul.f32 0.25, %v221_v47  ;;  %v230_v61 = vmul.f32 0.25, %v228_v48  ;;  %v1055_v62 = vld [vmem:[#allocation6 + $0x128] sm:$0xf0] }
  0x5c   : > { %715 = vmatpush.bf16.msrb.mxu1 %v1018_v16  ;;  %v1223_v3 = vld [vmem:[#allocation6 + $0x1a4] sm:$0xf]  ;;  %v1119_v4 = vld [vmem:[#allocation6 + $0x1a8] sm:$0xf0]  ;;  %v994_v6 = vor.u32 %v1191_v55, %v991_v56  ;;  %v1058_v7 = vor.u32 %v1207_v57, %v1055_v62  ;;  %v1189_v15 = vld [vmem:[#allocation6 + $0x94] sm:$0xf]  ;;  %v922_v21 = vor.u32 %v1173_v8, %v919_v13 }
  0x5d   : > { %728 = vmatpush.bf16.msrb.mxu2 %v1082_v17  ;;  %v240_v0 = vmax.f32 %v238_v45, %v239_v58  ;;  %v247_v1 = vmax.f32 %v245_v46, %v246_v59  ;;  %v250_v2 = vpack.c.bf16 %v230_v61, %v229_v60  ;;  %v1122_v14 = vor.u32 %v1223_v3, %v1119_v4  ;;  %v983_v18 = vld [vmem:[#allocation6 + $0x98] sm:$0xf0]  ;;  %v1205_v19 = vld [vmem:[#allocation6 + $0x114] sm:$0xf]  ;;  %v1171_v26 = vld [vmem:[#allocation6 + $0x4] sm:$0xf] }
  0x5e   : > { %741 = vmatpush.bf16.msrb.mxu3 %v1146_v20  ;;  %v1047_v20 = vld [vmem:[#allocation6 + $0x118] sm:$0xf0]  ;;  %v1221_v22 = vld [vmem:[#allocation6 + $0x194] sm:$0xf]  ;;  %v911_v27 = vld [vmem:[#allocation6 + $0x8] sm:$0xf0]  ;;  %v327_v45 = vstv %s326_s21 }
  0x5f   : > { %703 = vmatpush.bf16.msrb.mxu0 %v946_v28  ;;  %v241_v9 = vrot.slane %v240_v0, 1  ;;  %v248_v10 = vrot.slane %v247_v1, 1  ;;  %v253_v11 = vperm.slane %v250_v2, 0  ;;  %v254_v12 = vperm.slane %v250_v2, 4  ;;  %v1111_v23 = vld [vmem:[#allocation6 + $0x198] sm:$0xf0] }
  0x60   : > { %716 = vmatpush.bf16.msrb.mxu1 %v1010_v34  ;;  %v986_v28 = vor.u32 %v1189_v15, %v983_v18  ;;  %v1050_v29 = vor.u32 %v1205_v19, %v1047_v20  ;;  %v1187_v30 = vld [vmem:[#allocation6 + $0x84] sm:$0xf]  ;;  %v975_v31 = vld [vmem:[#allocation6 + $0x88] sm:$0xf0]  ;;  %v1114_v34 = vor.u32 %v1221_v22, %v1111_v23  ;;  %v914_v37 = vor.u32 %v1171_v26, %v911_v27  ;;  %s815_s22 = sshll.u32 %s811_s2, 4  ;;  %s800_s20 = scalar_lea.sflag [#allocation5], %s1552_s6  ;;  %s816_s22 = int_to_ptr.hbm [resolvable:$true] %s815_s22 }
  0x61   : > { %729 = vmatpush.bf16.msrb.mxu2 %v1074_v35  ;;  %v242_v16 = vmax.f32 %v240_v0, %v241_v9  ;;  %v249_v17 = vmax.f32 %v247_v1, %v248_v10  ;;  %656 = vmatmul.bf16.vlgmr.msra.gmra.mxu0 %v253_v11  ;;  %v1203_v35 = vld [vmem:[#allocation6 + $0x104] sm:$0xf]  ;;  %v1039_v36 = vld [vmem:[#allocation6 + $0x108] sm:$0xf0]  ;;  %v978_v40 = vor.u32 %v1187_v30, %v975_v31  ;;  %s1377_s23 = sshra.s32 %s816_s22, 4  ;;  %s1383_s28 = scalar_lea.hbm %s1623_s3, 16  ;;  %s1378_s23 = int_to_ptr.hbm [resolvable:$true] %s1377_s23 }
  0x62   : > { %742 = vmatpush.bf16.msrb.mxu3 %v1138_v43  ;;  %669 = vmatmul.bf16.vlgmr.msra.gmra.mxu1 %v254_v12  ;;  %v1219_v38 = vld [vmem:[#allocation6 + $0x184] sm:$0xf]  ;;  %v1103_v39 = vld [vmem:[#allocation6 + $0x188] sm:$0xf0]  ;;  %v1042_v41 = vor.u32 %v1203_v35, %v1039_v36  ;;  %s1379_s24 = scalar_lea.hbm %s1378_s23, 8  ;;  %p1384_p12 = scmp.lt.s32.totalorder %s1378_s23, %s1623_s3 }
  0x63   : > { %704 = vmatpush.bf16.msrb.mxu0 %v938_v52  ;;  %v251_v24 = vpack.c.bf16 %v249_v17, %v242_v16  ;;  %v1106_v42 = vor.u32 %v1219_v38, %v1103_v39  ;;  %p1380_p1 = scmp.ne.s32.totalorder %s1378_s23, %s1379_s24  ;;  %p1385_p8 = scmp.lt.s32.totalorder %s1383_s28, %s1379_s24 }
  0x64   : > { %717 = vmatpush.bf16.msrb.mxu1 %v1002_v53 }
  0x65   : > { %730 = vmatpush.bf16.msrb.mxu2 %v1066_v54  ;;  %v258_v32 = vperm.slane %v251_v24, 0  ;;  %v259_v33 = vperm.slane %v251_v24, 4  ;;  %p1381_p3 = pnand %p1380_p1, %p1521_p13  ;;  %p1386_p7 = por %p1385_p8, %p1384_p12 }
  0x66   : > { %743 = vmatpush.bf16.msrb.mxu3 %v1130_v63 }
  0x67   : > { %705 = vmatpush.bf16.msrb.mxu0 %v930_v5  ;;  %682 = vmatmul.bf16.vlgmr.msra.gmra.mxu2 %v258_v32  ;;  %p1382_p5 = pneg %p1381_p3 }
  0x68   : > { %718 = vmatpush.bf16.msrb.mxu1 %v994_v6  ;;  %695 = vmatmul.bf16.vlgmr.msra.gmra.mxu3 %v259_v33 }
  0x69   : > { %731 = vmatpush.bf16.msrb.mxu2 %v1058_v7  ;;  %p1387_p9 = pnand %p1386_p7, %p1382_p5 }
  0x6a   : > { %744 = vmatpush.bf16.msrb.mxu3 %v1122_v14 }
  0x6b   : > { %706 = vmatpush.bf16.msrb.mxu0 %v922_v21 }
  0x6c   : > { %719 = vmatpush.bf16.msrb.mxu1 %v986_v28 }
  0x6d   : > { %732 = vmatpush.bf16.msrb.mxu2 %v1050_v29 }
  0x6e   : > { %745 = vmatpush.bf16.msrb.mxu3 %v1114_v34 }
  0x6f   : > { %707 = vmatpush.bf16.msrb.mxu0 %v914_v37 }
  0x70   : > { %720 = vmatpush.bf16.msrb.mxu1 %v978_v40 }
  0x71   : > { %733 = vmatpush.bf16.msrb.mxu2 %v1042_v41 }
  0x72   : > { %746 = vmatpush.bf16.msrb.mxu3 %v1106_v42  ;;  %708 = vmatmul.bf16.vlgmr.msrb.gmra.mxu0 %v253_v11 }
  0x73   : > { %721 = vmatmul.bf16.vlgmr.msrb.gmra.mxu1 %v254_v12 }
  0x77   : > { %734 = vmatmul.bf16.vlgmr.msrb.gmra.mxu2 %v258_v32 }
  0x78   : > { %747 = vmatmul.bf16.vlgmr.msrb.gmra.mxu3 %v259_v33 }
  0xde   : > { %v657_v43 = vpop.f32.mrf.mxu0 }
  0xdf   : > { %v670_v44 = vpop.f32.mrf.mxu1  ;;  %v658_v46 = vadd.f32 %v657_v43, %v327_v45 }
  0xe1   : > { %v671_v49 = vadd.f32 %v670_v44, %v658_v46 }
  0xe6   : > { %v659_v47 = vpop.f32.mrf.mxu0 }
  0xe7   : > { %v672_v48 = vpop.f32.mrf.mxu1 }
  0xea   : > { %v683_v50 = vpop.f32.mrf.mxu2 }
  0xeb   : > { %v696_v51 = vpop.f32.mrf.mxu3  ;;  %v684_v52 = vadd.f32 %v683_v50, %v671_v49 }
  0xed   : > { %v697_v53 = vadd.f32 %v696_v51, %v684_v52 }
  0xef   : > { %v709_v54 = vpop.f32.mrf.mxu0  ;;  %v1163_v56 = vmul.f32 -1.442695, %v697_v53 }
  0xf0   : > { %v722_v55 = vpop.f32.mrf.mxu1  ;;  %v710_v59 = vadd.f32 %v709_v54, %v327_v45 }
  0xf1   : > { %1295 = vpow2.f32 %v1163_v56 }
  0xf2   : > { %v685_v57 = vpop.f32.mrf.mxu2  ;;  %v723_v63 = vadd.f32 %v722_v55, %v710_v59 }
  0xf3   : > { %v698_v58 = vpop.f32.mrf.mxu3 }
  0xf7   : > { %v711_v60 = vpop.f32.mrf.mxu0  ;;  %v1296_v62 = vpop.eup %1295 }
  0xf8   : > { %v724_v61 = vpop.f32.mrf.mxu1  ;;  %v758_v0 = vadd.f32 1.0, %v1296_v62 }
  0xfa   : > { %v735_v1 = vpop.f32.mrf.mxu2  ;;  %1297 = vrcp.f32 %v758_v0  ;;  %vm765_vm1 = vweird.f32 %v758_v0  ;;  %v771_v16 = vand.u32 2147483648, %v758_v0  ;;  %v769_v18 = vand.u32 2147483647, %v758_v0 }
  0xfb   : > { %v748_v2 = vpop.f32.mrf.mxu3  ;;  %v736_v3 = vadd.f32 %v735_v1, %v723_v63 }
  0xfc   : > { %v772_v24 = vor.u32 1.1754944e-38, %v771_v16  ;;  %vm770_vm5 = vcmp.eq.f32.partialorder %v769_v18, 8.507059e+37 }
  0xfd   : > { %v749_v4 = vadd.f32 %v748_v2, %v736_v3 }
  0xff   : > { %v1164_v5 = vmul.f32 -1.442695, %v749_v4 }
 0x100   : > { %v1298_v8 = vpop.eup %1297 }
 0x101   : > { %1299 = vpow2.f32 %v1164_v5  ;;  %v761_v10 = vmul.f32 %v1298_v8, %v758_v0  ;;  %vm766_vm2 = vweird.f32 %v1298_v8 }
 0x102   : > { %v737_v6 = vpop.f32.mrf.mxu2  ;;  %vm1577_vm3 = vmor %vm765_vm1, %vm766_vm2 }
 0x103   : > { %v750_v7 = vpop.f32.mrf.mxu3  ;;  %v762_v12 = vsub.f32 1.0, %v761_v10 }
 0x105   : > { %v763_v13 = vmul.f32 %v1298_v8, %v762_v12 }
 0x107   : > { %v1300_v9 = vpop.eup %1299  ;;  %v764_v17 = vadd.f32 %v1298_v8, %v763_v13 }
 0x108   : > { %v759_v11 = vadd.f32 1.0, %v1300_v9 }
 0x109   : > { %v768_v27 = vsel %vm1577_vm3, %v1298_v8, %v764_v17 }
 0x10a   : > { %1301 = vrcp.f32 %v759_v11  ;;  %v786_v21 = vand.u32 2147483648, %v759_v11  ;;  %v784_v23 = vand.u32 2147483647, %v759_v11  ;;  %vm780_vm6 = vweird.f32 %v759_v11 }
 0x10b   : > { %v773_v30 = vsel %vm770_vm5, %v772_v24, %v768_v27 }
 0x10c   : > { %v787_v28 = vor.u32 1.1754944e-38, %v786_v21  ;;  %vm785_vm8 = vcmp.eq.f32.partialorder %v784_v23, 8.507059e+37  ;;  %v790_v33 = vperm.slane %v773_v30, 0 }
 0x110   : > { %v1302_v14 = vpop.eup %1301 }
 0x111   : > { %v776_v15 = vmul.f32 %v1302_v14, %v759_v11  ;;  %vm781_vm4 = vweird.f32 %v1302_v14 }
 0x112   : > { %vm782_vm7 = vmor %vm780_vm6, %vm781_vm4 }
 0x113   : > { %v777_v19 = vsub.f32 1.0, %v776_v15 }
 0x115   : > { %v778_v22 = vmul.f32 %v1302_v14, %v777_v19 }
 0x117   : > { %v779_v26 = vadd.f32 %v1302_v14, %v778_v22 }
 0x119   : > { %v783_v29 = vsel %vm782_vm7, %v1302_v14, %v779_v26 }
 0x11a   : > { %v788_v31 = vsel %vm785_vm8, %v787_v28, %v783_v29 }
 0x11b   : > { %v791_v32 = vperm.slane %v788_v31, 0 }
 0x11d   : > { %v794_v34 = vrot.slane %v791_v32, 4 }
 0x11f   : > { %v795_v35 = vsel %vm214_vm0, %v790_v33, %v794_v34 }
 0x120   : > { %v797_v36 = vmul.f32 %v795_v35, %v1569_v25 }
 0x122   : > { %798 = vst [vmem:[%s206_s18] sm:$0xff] %v797_v36 }
 0x123   : > { %1390 = shalt.err (!%p1387_p9)
}
 0x124   : > { %1242 = dma.vmem_to_hbm [thread:$0]  (%p1521_p13), %s814_s19, 128, %s816_s22, %s800_s20  }
 0x125 PF: > { %s827_s6 = sand.u32 1, %s1421_s14   ;;  %p1631_p10 = scmp.ge.s32.totalorder %s1433_s17, 2 }
 0x126   : > { %s828_s9 = scalar_lea.sflag [#allocation5], %s827_s6 }
 0x127   : > { %p1253_p11 = pnand %p1631_p10, %p1526_p4 }
 0x129   : > { %p1254_p0 = pneg %p1253_p11 }
 0x12b   : > { %1416 = dma.done.wait (%p1254_p0), %s828_s9, 128  }
 0x12c   : > { %1418 = vsyncadd (%p1254_p0), %s828_s9, 4294967168  ;;  %p18_p2 = scmp.ge.s32.totalorder %s1501_s27, 4   ;;  %s1632_s14 = smov %s1425_s15 }
 0x12d   : > { %s1633_s15 = smov %s1429_s16  ;;  %s1634_s16 = smov %s1513_s30 }
 0x12e   : > { %s1635_s17 = smov %s1501_s27  ;;  %20 = sbr.rel (!%p18_p2) target bundleno = 8 (0x8), region = 81 }
 0x133   :  { %834 = vsyncpa [#allocation4], 1 }
 0x134   :  { %836 = vsyncpa [#allocation4 + $0x1], 1 }
 0x135   :  { %837 = vsyncpa [#allocation7], 1 }
 0x136   :  { %838 = vsyncpa [#allocation5], 1 }
 0x137   :  { %840 = vsyncpa [#allocation5 + $0x1], 1 }

</bundles_post_ra>
